<compile_context>
chip_gen: v6e
topology: v6e:2x2x1
jax: 0.10.0
libtpu: 0.0.40
codegen_flags: <defaults>
</compile_context>

<pallas_src>
import jax
import jax.numpy as jnp
from jax import lax
from jax.experimental import pallas as pl
from jax.experimental.pallas import tpu as pltpu


_VMEM_BUDGET_BYTES = 24 << 20    # data-buffer budget per grid step
_VMEM_LIMIT_BYTES = 32 << 20     # scoped limit handed to Mosaic (v7x-safe)
_TARGET_TILE_BYTES = 4 << 20     # per-buffer target (mem-bound roofline plateau)


def _sublane(itemsize: int) -> int:
    # 8 rows for 32-bit, 16 for 16-bit, 32 for 8-bit packed dtypes.
    return 8 * max(1, 4 // itemsize)


def _lane_pad(n: int) -> int:
    return ((n + 127) // 128) * 128


def _num_tensorcores() -> int:
    """Best-effort TensorCores per device (v7x has 2). Defaults to 1."""
    try:
        info = pltpu.get_tpu_info()
        for attr in ("num_cores", "core_count", "num_tensorcores",
                     "tensorcores_per_chip"):
            v = getattr(info, attr, None)
            if v:
                return int(v)
    except Exception:
        pass
    try:
        v = getattr(jax.devices()[0], "num_cores", None)
        if v:
            return int(v)
    except Exception:
        pass
    return 1


def _row_footprint_bytes(hw: int, itemsize: int) -> int:
    # 2 input + 2 output double buffers at the input dtype, plus one f32
    # staging tile for the cast/subtract intermediate (lane-padded width).
    return _lane_pad(hw) * (4 * itemsize + 4)


def _choose_tb(nc: int, hw: int, itemsize: int) -> int:
    """How many (n, c) plane-rows to process per grid step (single-pass path)."""
    sub = _sublane(itemsize)
    lanes = _lane_pad(hw)

    tb_target = max(1, _TARGET_TILE_BYTES // (lanes * itemsize))
    tb_budget = max(1, _VMEM_BUDGET_BYTES // _row_footprint_bytes(hw, itemsize))
    tb = max(sub, (min(tb_target, tb_budget) // sub) * sub)

    nc_ceil = ((nc + sub - 1) // sub) * sub
    tb = min(tb, nc_ceil)

    # Multi-TensorCore chips (v7x): keep >= 2 grid steps per core so each core
    # still double-buffers. Single-TC chips (v5e/v6e): never force a split.
    ncores = _num_tensorcores()
    if ncores > 1 and nc_ceil >= 2 * ncores * sub:
        cap = max(sub, (nc_ceil // (2 * ncores)) // sub * sub)
        tb = min(tb, cap)
    return tb


def _my_bn_kernel(x_ref, o_ref):
    # View: (TB, HW) -- TB independent (n, c) planes, flattened & lane-dense.
    x = x_ref[...]
    inv_hw = jnp.float32(1.0 / x.shape[-1])
    mean = jnp.sum(x, axis=-1, keepdims=True, dtype=jnp.float32) * inv_hw
    o_ref[...] = (x.astype(jnp.float32) - mean).astype(o_ref.dtype)


def _my_bn_single_pass(x_flat, nc, hw, itemsize):
    tb = _choose_tb(nc, hw, itemsize)
    grid = (pl.cdiv(nc, tb),)   # ragged last block is fine: kernel is row-local
    return pl.pallas_call(
        _my_bn_kernel,
        out_shape=jax.ShapeDtypeStruct((nc, hw), x_flat.dtype),
        grid_spec=pl.GridSpec(
            grid=grid,
            in_specs=[pl.BlockSpec((tb, hw), lambda i: (i, 0))],
            out_specs=pl.BlockSpec((tb, hw), lambda i: (i, 0)),
        ),
        compiler_params=pltpu.CompilerParams(
            dimension_semantics=("parallel",),
            vmem_limit_bytes=_VMEM_LIMIT_BYTES,
        ),
    )(x_flat)


def _my_bn_two_pass(x_flat, nc, hw, itemsize):
    """Fallback for huge planes: pass 1 -> per-plane means, pass 2 -> subtract."""
    sub = _sublane(itemsize)
    # ~2 MiB input tile per buffer at `sub` rows, lane-aligned.
    thw = max(128, ((_TARGET_TILE_BYTES // 2) // (sub * itemsize)) // 128 * 128)
    thw = min(thw, _lane_pad(hw))
    tb = sub

    nhw = pl.cdiv(hw, thw)
    ragged = (hw % thw) != 0

    def mean_kernel(x_ref, m_ref):
        j = pl.program_id(1)

        @pl.when(j == 0)
        def _():
            m_ref[...] = jnp.zeros_like(m_ref)

        x = x_ref[...].astype(jnp.float32)
        if ragged:
            # Mask out-of-range columns of the partial last HW tile so they do
            # not contaminate the per-row sum.
            col = lax.broadcasted_iota(jnp.int32, x.shape, 1) + j * thw
            x = jnp.where(col < hw, x, 0.0)
        m_ref[...] += jnp.sum(x, axis=-1, keepdims=True)

        @pl.when(j == pl.num_programs(1) - 1)
        def _():
            m_ref[...] *= jnp.float32(1.0 / hw)

    means = pl.pallas_call(
        mean_kernel,
        out_shape=jax.ShapeDtypeStruct((nc, 1), jnp.float32),
        grid_spec=pl.GridSpec(
            grid=(pl.cdiv(nc, tb), nhw),
            in_specs=[pl.BlockSpec((tb, thw), lambda i, j: (i, j))],
            out_specs=pl.BlockSpec((tb, 1), lambda i, j: (i, 0)),
        ),
        compiler_params=pltpu.CompilerParams(
            dimension_semantics=("parallel", "arbitrary"),
            vmem_limit_bytes=_VMEM_LIMIT_BYTES,
        ),
    )(x_flat)

    def sub_kernel(x_ref, m_ref, o_ref):
        o_ref[...] = (x_ref[...].astype(jnp.float32) - m_ref[...]).astype(o_ref.dtype)

    return pl.pallas_call(
        sub_kernel,
        out_shape=jax.ShapeDtypeStruct((nc, hw), x_flat.dtype),
        grid_spec=pl.GridSpec(
            grid=(pl.cdiv(nc, tb), nhw),
            in_specs=[
                pl.BlockSpec((tb, thw), lambda i, j: (i, j)),
                pl.BlockSpec((tb, 1), lambda i, j: (i, 0)),
            ],
            out_specs=pl.BlockSpec((tb, thw), lambda i, j: (i, j)),
        ),
        compiler_params=pltpu.CompilerParams(
            dimension_semantics=("parallel", "parallel"),
            vmem_limit_bytes=_VMEM_LIMIT_BYTES,
        ),
    )(x_flat, means)


def my_bn(x: jax.Array) -> jax.Array:
    """x: (N, C, H, W) -> x - per-(n, c) spatial mean, same shape & dtype."""
    N, C, H, W = x.shape
    NC, HW = N * C, H * W
    itemsize = jnp.dtype(x.dtype).itemsize
    x_flat = x.reshape(NC, HW)

    sub = _sublane(itemsize)
    if sub * _row_footprint_bytes(HW, itemsize) > _VMEM_BUDGET_BYTES:
        out_flat = _my_bn_two_pass(x_flat, NC, HW, itemsize)
    else:
        out_flat = _my_bn_single_pass(x_flat, NC, HW, itemsize)
    return out_flat.reshape(N, C, H, W)


if __name__ == "__main__":
    key = jax.random.PRNGKey(0)
    N, C, H, W = 2, 4, 16, 16
    x = jax.random.normal(key, (N, C, H, W), dtype=jnp.float32)

    ref = x - jnp.mean(x, axis=(2, 3), keepdims=True)

    # Main (single-pass) path.
    out = my_bn(x)
    jax.block_until_ready(out)
    assert out.shape == x.shape and out.dtype == x.dtype
    assert jnp.allclose(out, ref, atol=1e-5, rtol=1e-5)

    # Also exercise the large-plane fallback path on the same small input.
    out2 = _my_bn_two_pass(x.reshape(N * C, H * W), N * C, H * W,
                           jnp.dtype(x.dtype).itemsize).reshape(N, C, H, W)
    jax.block_until_ready(out2)
    assert jnp.allclose(out2, ref, atol=1e-5, rtol=1e-5)

    print("KERNEL_OK")
</pallas_src>

<mosaic_0001>
module attributes {stable_mosaic.version = 11 : i64} {
  func.func @_my_bn_kernel(%arg0: i32, %arg1: memref<8x256xf32, #tpu.memory_space<vmem>>, %arg2: memref<8x256xf32, #tpu.memory_space<vmem>>) attributes {dimension_semantics = [#tpu.dimension_semantics<parallel>], iteration_bounds = array<i64: 1>, scalar_prefetch = 0 : i64, scratch_operands = 0 : i64, tpu.core_type = #tpu.core_type<tc>, window_params = [{transform_indices = @transform_0, window_bounds = array<i64: 8, 256>}, {transform_indices = @transform_1, window_bounds = array<i64: 8, 256>}]} {
    %c0 = arith.constant 0 : index
    %c0_0 = arith.constant 0 : index
    %0 = vector.load %arg1[%c0, %c0_0] : memref<8x256xf32, #tpu.memory_space<vmem>>, vector<8x256xf32>
    %cst = arith.constant dense<0.000000e+00> : vector<8xf32>
    %1 = vector.multi_reduction <add>, %0, %cst [1] : vector<8x256xf32> to vector<8xf32>
    %2 = vector.shape_cast %1 : vector<8xf32> to vector<8x1xf32>
    %cst_1 = arith.constant 3.906250e-03 : f32
    %3 = vector.broadcast %cst_1 : f32 to vector<8x1xf32>
    %4 = arith.mulf %2, %3 : vector<8x1xf32>
    %5 = vector.broadcast %4 : vector<8x1xf32> to vector<8x256xf32>
    %6 = arith.subf %0, %5 : vector<8x256xf32>
    %c0_2 = arith.constant 0 : index
    %c0_3 = arith.constant 0 : index
    %7 = vector.load %arg2[%c0_2, %c0_3] : memref<8x256xf32, #tpu.memory_space<vmem>>, vector<8x256xf32>
    tpu.vector_store %arg2[%c0_2, %c0_3], %6 {strides = array<i32>} : memref<8x256xf32, #tpu.memory_space<vmem>>, vector<8x256xf32>,
    return
  }
  func.func @transform_0(%arg0: i32) -> (i32, i32) {
    %c0_i32 = arith.constant 0 : i32
    %c0_i32_0 = arith.constant 0 : i32
    return %arg0, %c0_i32 : i32, i32
  }
  func.func @transform_1(%arg0: i32) -> (i32, i32) {
    %c0_i32 = arith.constant 0 : i32
    %c0_i32_0 = arith.constant 0 : i32
    return %arg0, %c0_i32 : i32, i32
  }
}

</mosaic_0001>

<bundles_post_ra>
// kernel: tpu_custom_call.1
= control target key start
LH: loop header
LB: loop body
LE: loop exit
PB: predicated region body
PF: predicated region fallthrough
CT: control target
= control target key end

     0   :  { %6 = vsyncpa [#allocation3], 0  ;;  %s110_s0 = inlined_call_operand.hbm [shape: f32[8,256], index: 0, kind: input, shape index: {}]   ;;  %s111_s1 = inlined_call_operand.hbm [shape: f32[8,256], index: 1, kind: output, shape index: {}]  }
   0x1   :  { %7 = vsyncpa [#allocation4], 0  ;;  %s92_s6 = smov [#allocation2]  }
   0x2   :  { %s14_s7 = sshll.u32 %s92_s6, 4  ;;  %s15_s7 = int_to_ptr.vmem [resolvable:$true] %s14_s7 }
   0x3   :  { %s56_s8 = scalar_lea.vmem %s15_s7, 256  ;;  %p61_p1 = scmp.lt.s32.totalorder %s15_s7, %s15_s7 }
   0x4   :  { %p57_p0 = scmp.ne.s32.totalorder %s15_s7, %s56_s8  ;;  %p62_p2 = scmp.lt.s32.totalorder %s56_s8, %s56_s8 }
   0x6   :  { %p63_p3 = por %p62_p2, %p61_p1 }
   0x8   :  { %p64_p4 = pnand %p63_p3, %p57_p0 }
   0xa   :  { %67 = shalt.err (!%p64_p4)
}
   0xb   :  { %17 = dma.hbm_to_vmem [thread:$0]  %s110_s0, 256, %s15_s7, [#allocation3]  }
   0xc   :  { %88 = dma.done.wait [#allocation3], 256  }
   0xd   :  { %89 = vsyncadd [#allocation3], 4294967040  ;;  %v21_v0 = vld [vmem:[#allocation2] sm:$0xff]  ;;  %v22_v1 = vld [vmem:[#allocation2 + $0x8] sm:$0xff]  ;;  %s93_s11 = smov [#allocation5]  }
   0xe   :  { %v23_v2 = vadd.f32 %v22_v1, %v21_v0  ;;  %s37_s12 = sshll.u32 %s93_s11, 4  ;;  %s38_s12 = int_to_ptr.vmem [resolvable:$true] %s37_s12 }
   0xf   :  { %s68_s13 = scalar_lea.vmem %s38_s12, 256  ;;  %p73_p6 = scmp.lt.s32.totalorder %s38_s12, %s38_s12 }
  0x10   :  { %24 = vadd.xlane.f32.xlu0 %v23_v2  ;;  %p69_p5 = scmp.ne.s32.totalorder %s38_s12, %s68_s13  ;;  %p74_p7 = scmp.lt.s32.totalorder %s68_s13, %s68_s13 }
  0x12   :  { %p75_p8 = por %p74_p7, %p73_p6 }
  0x14   :  { %p76_p9 = pnand %p75_p8, %p69_p5 }
  0x99   :  { %v25_v3 = vpop.xlane.xlu0 %24 }
  0x9a   :  { %v26_v4 = vmul.f32 0.00390625, %v25_v3 }
  0x9c   :  { %v27_v5 = vsub.f32 %v21_v0, %v26_v4  ;;  %v28_v6 = vsub.f32 %v22_v1, %v26_v4 }
  0x9e   :  { %29 = vst [vmem:[#allocation5] sm:$0xff] %v27_v5  ;;  %30 = vst [vmem:[#allocation5 + $0x8] sm:$0xff] %v28_v6 }
  0x9f   :  { %79 = shalt.err (!%p76_p9)
}
  0xa0   :  { %40 = dma.vmem_to_hbm [thread:$0]  %s38_s12, 256, %s111_s1, [#allocation4]  }
  0xa1   :  { %90 = dma.done.wait [#allocation4], 256  }
  0xa2   :  { %91 = vsyncadd [#allocation4], 4294967040 }
  0xa3   :  { %44 = vsyncpa [#allocation3], 1 }
  0xa4   :  { %45 = vsyncpa [#allocation4], 1 }

</bundles_post_ra>
